<compile_context>
chip_gen: v7x
topology: tpu7x:2x2x1
jax: 0.10.0
libtpu: 0.0.40
codegen_flags: <defaults>
</compile_context>

<pallas_src>
import math
from functools import partial

import jax
import jax.numpy as jnp
from jax.experimental import pallas as pl
from jax.experimental.pallas import tpu as pltpu

LN_EPS = 1e-12
NEG_INF = -1e30                       # f32-safe large negative (scores stay f32)


def _detect_vmem_bytes():
    try:
        return int(pltpu.get_tpu_info().vmem_capacity_bytes)
    except Exception:
        return 128 * 1024 * 1024      # v5e/v6e default if query unavailable


_VMEM_CAP = _detect_vmem_bytes()
VMEM_LIMIT = int(min(_VMEM_CAP * 3 // 4, 112 * 1024 * 1024))   # ≈48 MiB v7x, ≈96 MiB v5e/v6e
_BIG_VMEM = _VMEM_CAP >= 100 * 1024 * 1024

# Generation-aware tile caps.
MM_TM_CAP, MM_TN_CAP, MM_TK_CAP = (512, 1024, 512) if _BIG_VMEM else (256, 512, 512)
ATTN_TQ_CAP = ATTN_TK_CAP = 256 if _BIG_VMEM else 128
ATTN_HB_CAP = 8 if _BIG_VMEM else 4
ROPE_TR_CAP = 256


def _tile(dim, cap):
    """Largest divisor of `dim` not exceeding `cap`."""
    if dim <= cap:
        return dim
    t = cap
    while dim % t:
        t -= 1
    return t


# --------------------------------------------------------------------------
# LayerNorm kernel (reference semantics: divide by (var + eps), no sqrt)
# --------------------------------------------------------------------------
def _layernorm_kernel(x_ref, w_ref, b_ref, o_ref):
    x = x_ref[...].astype(jnp.float32)
    mu = jnp.mean(x, axis=-1, keepdims=True)
    var = jnp.mean((x - mu) ** 2, axis=-1, keepdims=True)
    o_ref[...] = (w_ref[...] * (x - mu) / (var + LN_EPS) + b_ref[...]).astype(o_ref.dtype)


def layernorm(x, w, b, *, out_dtype=jnp.float32):
    M, H = x.shape
    # Scale the row tile with H so in/out double buffers stay well under VMEM.
    tm = _tile(M, max(8, min(512, (2 * 1024 * 1024) // max(H, 1))))
    return pl.pallas_call(
        _layernorm_kernel,
        out_shape=jax.ShapeDtypeStruct((M, H), out_dtype),
        grid_spec=pltpu.PrefetchScalarGridSpec(
            num_scalar_prefetch=0,
            grid=(M // tm,),
            in_specs=[pl.BlockSpec((tm, H), lambda i: (i, 0)),
                      pl.BlockSpec((1, H), lambda i: (0, 0)),
                      pl.BlockSpec((1, H), lambda i: (0, 0))],
            out_specs=pl.BlockSpec((tm, H), lambda i: (i, 0))),
        compiler_params=pltpu.CompilerParams(
            dimension_semantics=("parallel",),
            vmem_limit_bytes=VMEM_LIMIT),
    )(x, w, b)


# --------------------------------------------------------------------------
# Generic tiled matmul kernel: bf16 MXU operands, f32 accumulation,
# fused bias / GELU / residual epilogue.  Used for QKV, out-proj, FF1, FF2
# and the LM head (against a pre-transposed (H, V) embedding).
# --------------------------------------------------------------------------
def _matmul_kernel(*refs, activation, has_bias, has_residual):
    it = iter(refs)
    x_ref = next(it)
    w_ref = next(it)
    b_ref = next(it) if has_bias else None
    r_ref = next(it) if has_residual else None
    o_ref = next(it)
    acc_ref = next(it)

    k = pl.program_id(2)

    @pl.when(k == 0)
    def _():
        acc_ref[...] = jnp.zeros_like(acc_ref)

    xb = x_ref[...]
    if xb.dtype != jnp.bfloat16:
        xb = xb.astype(jnp.bfloat16)
    acc_ref[...] += jnp.dot(xb, w_ref[...], preferred_element_type=jnp.float32)

    @pl.when(k == pl.num_programs(2) - 1)
    def _():
        r = acc_ref[...]
        if has_bias:
            r = r + b_ref[...]
        if activation == "gelu":                       # exact erf GELU (f32 VPU/EUP)
            r = 0.5 * r * (1.0 + jax.lax.erf(r * (1.0 / math.sqrt(2.0))))
        if has_residual:
            r = r + r_ref[...].astype(jnp.float32)
        o_ref[...] = r.astype(o_ref.dtype)


def matmul(x, w, bias=None, residual=None, *, activation=None,
           out_dtype=jnp.float32,
           tm_cap=MM_TM_CAP, tn_cap=MM_TN_CAP, tk_cap=MM_TK_CAP):
    M, K = x.shape
    assert w.shape[0] == K
    Ncols = w.shape[1]
    tm, tn, tk = _tile(M, tm_cap), _tile(Ncols, tn_cap), _tile(K, tk_cap)

    in_specs = [pl.BlockSpec((tm, tk), lambda i, j, k: (i, k)),
                pl.BlockSpec((tk, tn), lambda i, j, k: (k, j))]
    args = [x, w]
    if bias is not None:
        in_specs.append(pl.BlockSpec((1, tn), lambda i, j, k: (0, j)))
        args.append(bias)
    if residual is not None:
        in_specs.append(pl.BlockSpec((tm, tn), lambda i, j, k: (i, j)))
        args.append(residual)

    kern = partial(_matmul_kernel, activation=activation,
                   has_bias=bias is not None,
                   has_residual=residual is not None)
    return pl.pallas_call(
        kern,
        out_shape=jax.ShapeDtypeStruct((M, Ncols), out_dtype),
        grid_spec=pltpu.PrefetchScalarGridSpec(
            num_scalar_prefetch=0,
            grid=(M // tm, Ncols // tn, K // tk),
            in_specs=in_specs,
            out_specs=pl.BlockSpec((tm, tn), lambda i, j, k: (i, j)),
            scratch_shapes=[pltpu.VMEM((tm, tn), jnp.float32)]),
        compiler_params=pltpu.CompilerParams(
            dimension_semantics=("parallel", "parallel", "arbitrary"),
            vmem_limit_bytes=VMEM_LIMIT),
    )(*args)


# --------------------------------------------------------------------------
# RoPE kernel: ropes Q (and pre-scales by 1/sqrt(d)) and K once per layer,
# directly from the (3, B, h, N, d) QKV tensor (no wrapper relayout).
# --------------------------------------------------------------------------
def _rope_kernel(q_ref, k_ref, cos_ref, sin_ref, qo_ref, ko_ref, *, scale):
    cos = cos_ref[...][None]                     # (1, tr, d) f32
    sin = sin_ref[...][None]

    def rope(t):
        t = t.astype(jnp.float32)
        half = t.shape[-1] // 2
        rot = jnp.concatenate([-t[..., half:], t[..., :half]], axis=-1)
        return t * cos + rot * sin

    q = q_ref[...][0, 0]                         # (hb, tr, d)
    kk = k_ref[...][0, 0]
    qo_ref[0] = (rope(q) * scale).astype(qo_ref.dtype)
    ko_ref[0] = rope(kk).astype(ko_ref.dtype)


def rope_qk(qkv_t, cosf, sinf, *, scale, hb_cap=ATTN_HB_CAP, tr_cap=ROPE_TR_CAP):
    _, B, h, N, d = qkv_t.shape
    hb, tr = _tile(h, hb_cap), _tile(N, tr_cap)
    kern = partial(_rope_kernel, scale=scale)
    out_sd = jax.ShapeDtypeStruct((B, h, N, d), jnp.bfloat16)
    out_spec = pl.BlockSpec((1, hb, tr, d), lambda b, hi, ri: (b, hi, ri, 0))
    return pl.pallas_call(
        kern,
        out_shape=(out_sd, out_sd),
        grid_spec=pltpu.PrefetchScalarGridSpec(
            num_scalar_prefetch=0,
            grid=(B, h // hb, N // tr),
            in_specs=[
                pl.BlockSpec((1, 1, hb, tr, d), lambda b, hi, ri: (0, b, hi, ri, 0)),  # q slice
                pl.BlockSpec((1, 1, hb, tr, d), lambda b, hi, ri: (1, b, hi, ri, 0)),  # k slice
                pl.BlockSpec((tr, d), lambda b, hi, ri: (ri, 0)),                      # cos
                pl.BlockSpec((tr, d), lambda b, hi, ri: (ri, 0)),                      # sin
            ],
            out_specs=(out_spec, out_spec)),
        compiler_params=pltpu.CompilerParams(
            dimension_semantics=("parallel", "parallel", "parallel"),
            vmem_limit_bytes=VMEM_LIMIT),
    )(qkv_t, qkv_t, cosf, sinf)


# --------------------------------------------------------------------------
# Flash attention kernel: online softmax, head-tiled, causal-block skipping,
# pad+causal mask built in-kernel from iota + (B,1,N) pad mask.
# Grid: (B, h/hb, q_tiles, kv_tiles).
# --------------------------------------------------------------------------
def _flash_attn_kernel(q_ref, k_ref, v_ref, pm_ref, o_ref,
                       m_scr, l_scr, acc_scr, *, tq, tk):
    qi = pl.program_id(2)
    ki = pl.program_id(3)
    nk = pl.num_programs(3)

    @pl.when(ki == 0)
    def _():
        m_scr[...] = jnp.full(m_scr.shape, -jnp.inf, m_scr.dtype)
        l_scr[...] = jnp.zeros_like(l_scr)
        acc_scr[...] = jnp.zeros_like(acc_scr)

    # Skip kv blocks that are entirely above the causal diagonal.
    @pl.when(ki * tk <= qi * tq + (tq - 1))
    def _():
        q = q_ref[0]                                       # (hb, tq, d) bf16, roped+scaled
        kk = k_ref[0]                                      # (hb, tk, d) bf16, roped
        v = v_ref[...][0, 0]                               # (hb, tk, d) bf16
        s = jnp.einsum('hqd,hkd->hqk', q, kk,
                       preferred_element_type=jnp.float32)
        row = jax.lax.broadcasted_iota(jnp.int32, (tq, tk), 0) + qi * tq
        col = jax.lax.broadcasted_iota(jnp.int32, (tq, tk), 1) + ki * tk
        keep = (row >= col) & (pm_ref[0] != 0)             # (tq, tk)
        s = jnp.where(keep[None], s, NEG_INF)

        m_prev = m_scr[...]
        m_new = jnp.maximum(m_prev, jnp.max(s, axis=-1, keepdims=True))
        alpha = jnp.exp(m_prev - m_new)
        p = jnp.exp(s - m_new)
        l_scr[...] = alpha * l_scr[...] + jnp.sum(p, axis=-1, keepdims=True)
        acc_scr[...] = alpha * acc_scr[...] + jnp.einsum(
            'hqk,hkd->hqd', p.astype(jnp.bfloat16), v,
            preferred_element_type=jnp.float32)
        m_scr[...] = m_new

    @pl.when(ki == nk - 1)
    def _():
        inv = pl.reciprocal(l_scr[...], approx=True)
        o_ref[0] = (acc_scr[...] * inv).astype(o_ref.dtype)


def flash_attention(q, k, qkv_t, pad_mask, *,
                    tq_cap=ATTN_TQ_CAP, tk_cap=ATTN_TK_CAP, hb_cap=ATTN_HB_CAP):
    B, h, N, d = q.shape
    tq, tk, hb = _tile(N, tq_cap), _tile(N, tk_cap), _tile(h, hb_cap)

    def _kclamp(qi, ki):
        return jnp.minimum(ki, (qi * tq + tq - 1) // tk)

    q_map = lambda b, hi, qi, ki: (b, hi, qi, 0)
    k_map = lambda b, hi, qi, ki: (b, hi, _kclamp(qi, ki), 0)
    v_map = lambda b, hi, qi, ki: (2, b, hi, _kclamp(qi, ki), 0)
    pm_map = lambda b, hi, qi, ki: (b, 0, _kclamp(qi, ki))

    kern = partial(_flash_attn_kernel, tq=tq, tk=tk)
    return pl.pallas_call(
        kern,
        out_shape=jax.ShapeDtypeStruct((B, h, N, d), jnp.bfloat16),
        grid_spec=pltpu.PrefetchScalarGridSpec(
            num_scalar_prefetch=0,
            grid=(B, h // hb, N // tq, N // tk),
            in_specs=[
                pl.BlockSpec((1, hb, tq, d), q_map),         # roped, scaled q  (bf16)
                pl.BlockSpec((1, hb, tk, d), k_map),         # roped k          (bf16)
                pl.BlockSpec((1, 1, hb, tk, d), v_map),      # v straight from qkv tensor
                pl.BlockSpec((1, 1, tk), pm_map),            # key pad mask
            ],
            out_specs=pl.BlockSpec((1, hb, tq, d), q_map),
            scratch_shapes=[pltpu.VMEM((hb, tq, 1), jnp.float32),   # running max
                            pltpu.VMEM((hb, tq, 1), jnp.float32),   # running sum
                            pltpu.VMEM((hb, tq, d), jnp.float32)]), # output accum
        compiler_params=pltpu.CompilerParams(
            dimension_semantics=("parallel", "parallel", "parallel", "arbitrary"),
            vmem_limit_bytes=VMEM_LIMIT),
    )(q, k, qkv_t, pad_mask)


# --------------------------------------------------------------------------
# Transformer block (wrapper stitching the Pallas kernels together)
# --------------------------------------------------------------------------
def transformer_block(x2d, pad_mask, cosf, sinf, layer, B, N, n_heads, head_dim):
    BN, H = x2d.shape

    h1 = layernorm(x2d, layer['ln1_w'], layer['ln1_b'], out_dtype=jnp.bfloat16)
    qkv = matmul(h1, layer['w_qkv'], layer['b_qkv'], out_dtype=jnp.bfloat16)   # (BN, 3H) bf16

    # One fused relayout: 'b n (c h d) -> c b h n d'.  q/k/v/cache all come
    # from this single tensor (no separate per-tensor transposes, no kv stack).
    qkv_t = jnp.transpose(qkv.reshape(B, N, 3, n_heads, head_dim), (2, 0, 3, 1, 4))
    next_prefix_kv = qkv_t[1:3]                            # (2, B, h, N, d) PRE-RoPE

    # RoPE once per layer (q scaled by 1/sqrt(d)); attention hot loop is rope-free.
    q_r, k_r = rope_qk(qkv_t, cosf, sinf, scale=1.0 / math.sqrt(head_dim))

    attn = flash_attention(q_r, k_r, qkv_t, pad_mask)      # (B, h, N, d) bf16
    attn2d = jnp.transpose(attn, (0, 2, 1, 3)).reshape(BN, H)   # 'b h n d -> b n (h d)', bf16

    x1 = matmul(attn2d, layer['w_o'], layer['b_o'], residual=x2d)              # f32 residual
    h2 = layernorm(x1, layer['ln2_w'], layer['ln2_b'], out_dtype=jnp.bfloat16)
    g = matmul(h2, layer['w_ff1'], layer['b_ff1'], activation="gelu",
               out_dtype=jnp.bfloat16)
    x2 = matmul(g, layer['w_ff2'], layer['b_ff2'], residual=x1)                # f32 residual
    return x2, next_prefix_kv


# --------------------------------------------------------------------------
# Parameter construction + full forward
# --------------------------------------------------------------------------
def init_params(key, vocab, hidden, n_layers):
    F = 4 * hidden
    keys = jax.random.split(key, 1 + 6 * n_layers)
    params = {'emb': jax.random.normal(keys[0], (vocab, hidden), jnp.float32) * 0.02,
              'ln_w': jnp.ones((1, hidden), jnp.float32),
              'ln_b': jnp.zeros((1, hidden), jnp.float32),
              'blocks': []}
    for l in range(n_layers):
        k = keys[1 + 6 * l: 1 + 6 * (l + 1)]
        params['blocks'].append({
            'ln1_w': jnp.ones((1, hidden), jnp.float32),
            'ln1_b': jnp.zeros((1, hidden), jnp.float32),
            # matmul weights stored bf16 for the MXU; biases/LN params stay f32.
            'w_qkv': (jax.random.normal(k[0], (hidden, 3 * hidden), jnp.float32) * 0.02
                      ).astype(jnp.bfloat16),
            'b_qkv': jax.random.normal(k[1], (1, 3 * hidden), jnp.float32) * 0.02,
            'w_o':   (jax.random.normal(k[2], (hidden, hidden), jnp.float32) * 0.02
                      ).astype(jnp.bfloat16),
            'b_o':   jax.random.normal(k[3], (1, hidden), jnp.float32) * 0.02,
            'ln2_w': jnp.ones((1, hidden), jnp.float32),
            'ln2_b': jnp.zeros((1, hidden), jnp.float32),
            'w_ff1': (jax.random.normal(k[4], (hidden, F), jnp.float32) * 0.02
                      ).astype(jnp.bfloat16),
            'b_ff1': jnp.zeros((1, F), jnp.float32),
            'w_ff2': (jax.random.normal(k[5], (F, hidden), jnp.float32) * 0.02
                      ).astype(jnp.bfloat16),
            'b_ff2': jnp.zeros((1, hidden), jnp.float32),
        })
    return params


def sfllm_forward(input_ids, params, *, n_heads, pad_token_id,
                  rope_theta=10000.0, interpolate_factor=1.0):
    B, N = input_ids.shape
    H = params['emb'].shape[1]
    d = H // n_heads
    BN = B * N

    # Embedding lookup (glue).
    x = params['emb'][input_ids].astype(jnp.float32).reshape(BN, H)

    # generate=True: only the (B, N) key pad-mask is shipped; causal part is
    # built inside the attention kernel from iota.
    pad_mask = (input_ids != pad_token_id).astype(jnp.int32).reshape(B, 1, N)

    # Full-width RoPE tables (N, d) for rotate-half form (glue).
    pos = jnp.arange(N, dtype=jnp.float32) / interpolate_factor
    inv_freq = 1.0 / (rope_theta ** (jnp.arange(0, d, 2, dtype=jnp.float32) / d))
    freqs = pos[:, None] * inv_freq[None, :]                       # (N, d/2)
    cosf = jnp.concatenate([jnp.cos(freqs), jnp.cos(freqs)], axis=-1)
    sinf = jnp.concatenate([jnp.sin(freqs), jnp.sin(freqs)], axis=-1)

    next_prefix_kv_list = []
    for layer in params['blocks']:
        x, kv = transformer_block(x, pad_mask, cosf, sinf, layer, B, N, n_heads, d)
        next_prefix_kv_list.append(kv)

    # Final LayerNorm + tied-embedding decoder (reuse_emb=True): pre-transpose
    # the embedding to (H, V) bf16 once so the LM head is a plain (K,N) matmul
    # with no per-tile transposes inside the kernel.
    hf = layernorm(x, params['ln_w'], params['ln_b'], out_dtype=jnp.bfloat16)
    emb_t = jnp.transpose(params['emb'].astype(jnp.bfloat16))      # (H, V) one-time
    logits = matmul(hf, emb_t, out_dtype=jnp.float32).reshape(B, N, -1)
    return logits, next_prefix_kv_list


# --------------------------------------------------------------------------
if __name__ == "__main__":
    VOCAB = 256
    PAD = 0
    HIDDEN = 128
    N_HEADS = 2
    N_LAYERS = 2
    BATCH = 2
    SEQ = 8

    key = jax.random.PRNGKey(0)
    pkey, ikey = jax.random.split(key)
    params = init_params(pkey, VOCAB, HIDDEN, N_LAYERS)
    input_ids = jax.random.randint(ikey, (BATCH, SEQ), 1, VOCAB, dtype=jnp.int32)

    logits, kv_list = sfllm_forward(input_ids, params,
                                    n_heads=N_HEADS, pad_token_id=PAD)
    logits = jax.block_until_ready(logits)
    for kv in kv_list:
        jax.block_until_ready(kv)

    assert logits.shape == (BATCH, SEQ, VOCAB)
    assert kv_list[0].shape == (2, BATCH, N_HEADS, SEQ, HIDDEN // N_HEADS)
    assert bool(jnp.all(jnp.isfinite(logits)))
    print("KERNEL_OK")
</pallas_src>

<mosaic_0001>
module attributes {stable_mosaic.version = 11 : i64} {
  func.func @_layernorm_kernel(%arg0: i32, %arg1: memref<16x128xf32, #tpu.memory_space<vmem>>, %arg2: memref<1x128xf32, #tpu.memory_space<vmem>>, %arg3: memref<1x128xf32, #tpu.memory_space<vmem>>, %arg4: memref<16x128xbf16, #tpu.memory_space<vmem>>) attributes {dimension_semantics = [#tpu.dimension_semantics<parallel>], iteration_bounds = array<i64: 1>, scalar_prefetch = 0 : i64, scratch_operands = 0 : i64, tpu.core_type = #tpu.core_type<tc>, window_params = [{transform_indices = @transform_0, window_bounds = array<i64: 16, 128>}, {pipeline_mode = #tpu.pipeline_mode<synchronous>, transform_indices = @transform_1, window_bounds = array<i64: 1, 128>}, {pipeline_mode = #tpu.pipeline_mode<synchronous>, transform_indices = @transform_2, window_bounds = array<i64: 1, 128>}, {transform_indices = @transform_3, window_bounds = array<i64: 16, 128>}]} {
    %c0 = arith.constant 0 : index
    %c0_0 = arith.constant 0 : index
    %0 = vector.load %arg1[%c0, %c0_0] : memref<16x128xf32, #tpu.memory_space<vmem>>, vector<16x128xf32>
    %cst = arith.constant dense<0.000000e+00> : vector<16xf32>
    %1 = vector.multi_reduction <add>, %0, %cst [1] : vector<16x128xf32> to vector<16xf32>
    %2 = vector.shape_cast %1 : vector<16xf32> to vector<16x1xf32>
    %cst_1 = arith.constant 1.280000e+02 : f32
    %3 = vector.broadcast %cst_1 : f32 to vector<16x1xf32>
    %4 = arith.divf %2, %3 : vector<16x1xf32>
    %5 = vector.broadcast %4 : vector<16x1xf32> to vector<16x128xf32>
    %6 = arith.subf %0, %5 : vector<16x128xf32>
    %7 = arith.mulf %6, %6 : vector<16x128xf32>
    %cst_2 = arith.constant dense<0.000000e+00> : vector<16xf32>
    %8 = vector.multi_reduction <add>, %7, %cst_2 [1] : vector<16x128xf32> to vector<16xf32>
    %9 = vector.shape_cast %8 : vector<16xf32> to vector<16x1xf32>
    %cst_3 = arith.constant 1.280000e+02 : f32
    %10 = vector.broadcast %cst_3 : f32 to vector<16x1xf32>
    %11 = arith.divf %9, %10 : vector<16x1xf32>
    %c0_4 = arith.constant 0 : index
    %c0_5 = arith.constant 0 : index
    %12 = vector.load %arg2[%c0_4, %c0_5] : memref<1x128xf32, #tpu.memory_space<vmem>>, vector<1x128xf32>
    %13 = vector.broadcast %4 : vector<16x1xf32> to vector<16x128xf32>
    %14 = arith.subf %0, %13 : vector<16x128xf32>
    %15 = vector.broadcast %12 : vector<1x128xf32> to vector<16x128xf32>
    %16 = arith.mulf %15, %14 : vector<16x128xf32>
    %cst_6 = arith.constant 9.99999996E-13 : f32
    %17 = vector.broadcast %cst_6 : f32 to vector<16x1xf32>
    %18 = arith.addf %11, %17 : vector<16x1xf32>
    %19 = vector.broadcast %18 : vector<16x1xf32> to vector<16x128xf32>
    %20 = arith.divf %16, %19 : vector<16x128xf32>
    %c0_7 = arith.constant 0 : index
    %c0_8 = arith.constant 0 : index
    %21 = vector.load %arg3[%c0_7, %c0_8] : memref<1x128xf32, #tpu.memory_space<vmem>>, vector<1x128xf32>
    %22 = vector.broadcast %21 : vector<1x128xf32> to vector<16x128xf32>
    %23 = arith.addf %20, %22 : vector<16x128xf32>
    %24 = arith.truncf %23 : vector<16x128xf32> to vector<16x128xbf16>
    %c0_9 = arith.constant 0 : index
    %c0_10 = arith.constant 0 : index
    %25 = vector.load %arg4[%c0_9, %c0_10] : memref<16x128xbf16, #tpu.memory_space<vmem>>, vector<16x128xbf16>
    tpu.vector_store %arg4[%c0_9, %c0_10], %24 {strides = array<i32>} : memref<16x128xbf16, #tpu.memory_space<vmem>>, vector<16x128xbf16>,
    return
  }
  func.func @transform_0(%arg0: i32) -> (i32, i32) {
    %c0_i32 = arith.constant 0 : i32
    %c0_i32_0 = arith.constant 0 : i32
    return %arg0, %c0_i32 : i32, i32
  }
  func.func @transform_1(%arg0: i32) -> (i32, i32) {
    %c0_i32 = arith.constant 0 : i32
    %c0_i32_0 = arith.constant 0 : i32
    %c0_i32_1 = arith.constant 0 : i32
    return %c0_i32, %c0_i32_0 : i32, i32
  }
  func.func @transform_2(%arg0: i32) -> (i32, i32) {
    %c0_i32 = arith.constant 0 : i32
    %c0_i32_0 = arith.constant 0 : i32
    %c0_i32_1 = arith.constant 0 : i32
    return %c0_i32, %c0_i32_0 : i32, i32
  }
  func.func @transform_3(%arg0: i32) -> (i32, i32) {
    %c0_i32 = arith.constant 0 : i32
    %c0_i32_0 = arith.constant 0 : i32
    return %arg0, %c0_i32 : i32, i32
  }
}

</mosaic_0001>

<bundles_post_ra>
// kernel: tpu_custom_call.1
= control target key start
LH: loop header
LB: loop body
LE: loop exit
PB: predicated region body
PF: predicated region fallthrough
CT: control target
= control target key end

     0   :  { %8 = vsyncpa [#allocation3], 0  ;;  %s323_s0 = inlined_call_operand.hbm [shape: f32[16,128], index: 0, kind: input, shape index: {}]   ;;  %s324_s1 = inlined_call_operand.hbm [shape: f32[1,128], index: 1, kind: input, shape index: {}]   ;;  %s325_s2 = inlined_call_operand.hbm [shape: f32[1,128], index: 2, kind: input, shape index: {}]   ;;  %s326_s3 = inlined_call_operand.hbm [shape: bf16[16,128], index: 3, kind: output, shape index: {}]  }
   0x1   :  { %9 = vsyncpa [#allocation6], 0 }
   0x2   :  { %10 = vsyncpa [#allocation4], 0  ;;  %s240_s12 = smov [#allocation5]   ;;  %s241_s14 = smov [#allocation2]  }
   0x3   :  { %s29_s13 = sshll.u32 %s240_s12, 4  ;;  %s16_s15 = sshll.u32 %s241_s14, 4  ;;  %s30_s13 = int_to_ptr.vmem [resolvable:$true] %s29_s13  ;;  %s268_s15 = int_to_ptr.vmem [resolvable:$true] %s16_s15 }
   0x4   :  { %s146_s18 = scalar_lea.hbm %s324_s1, 16 }
   0x5   :  { %p147_p0 = scmp.ne.s32.totalorder %s324_s1, %s146_s18  ;;  %p150_p1 = scmp.lt.u32.totalorder %s146_s18, %s324_s1 }
   0x7   :  { %p152_p2 = pnand %p150_p1, %p147_p0 }
   0x9   :  { %155 = shalt.err (!%p152_p2)
}
   0xa   :  { %s156_s23 = scalar_lea.vmem %s30_s13, 16  ;;  %s160_s24 = scalar_lea.vmem %s30_s13, 32 }
   0xb   :  { %p157_p3 = scmp.ne.s32.totalorder %s30_s13, %s156_s23  ;;  %p161_p4 = scmp.lt.s32.totalorder %s30_s13, %s30_s13 }
   0xc   :  { %p162_p5 = scmp.lt.s32.totalorder %s160_s24, %s156_s23 }
   0xe   :  { %p163_p6 = por %p162_p5, %p161_p4 }
  0x10   :  { %p164_p7 = pnand %p163_p6, %p157_p3 }
  0x12   :  { %167 = shalt.err (!%p164_p7)
}
  0x13   :  { %32 = dma.hbm_to_vmem [thread:$0]  %s324_s1, 16, %s30_s13, [#allocation6]  }
  0x14   :  { %s168_s29 = scalar_lea.hbm %s323_s0, 256 }
  0x15   :  { %p169_p8 = scmp.ne.s32.totalorder %s323_s0, %s168_s29  ;;  %p172_p9 = scmp.lt.u32.totalorder %s168_s29, %s323_s0 }
  0x17   :  { %p174_p10 = pnand %p172_p9, %p169_p8 }
  0x19   :  { %177 = shalt.err (!%p174_p10)
}
  0x1a   :  { %s178_s7 = scalar_lea.vmem %s268_s15, 256  ;;  %p183_p12 = scmp.lt.s32.totalorder %s268_s15, %s268_s15 }
  0x1b   :  { %p179_p11 = scmp.ne.s32.totalorder %s268_s15, %s178_s7  ;;  %p184_p13 = scmp.lt.s32.totalorder %s178_s7, %s178_s7 }
  0x1d   :  { %p185_p0 = por %p184_p13, %p183_p12 }
  0x1f   :  { %p186_p1 = pnand %p185_p0, %p179_p11 }
  0x21   :  { %189 = shalt.err (!%p186_p1)
}
  0x22   :  { %s242_s1 = smov 128   ;;  %s243_s8 = smov 8  }
  0x23   :  { %22 = dma.hbm_to_vmem [thread:$0]  %s323_s0, 256, %s268_s15, [#allocation3], %s242_s1, %s242_s1, %s243_s8  }
  0x24   :  { %s244_s11 = smov [#allocation7]   ;;  %s190_s16 = scalar_lea.hbm %s325_s2, 16 }
  0x25   :  { %s39_s12 = sshll.u32 %s244_s11, 4  ;;  %p191_p2 = scmp.ne.s32.totalorder %s325_s2, %s190_s16  ;;  %s40_s12 = int_to_ptr.vmem [resolvable:$true] %s39_s12 }
  0x26   :  { %p194_p3 = scmp.lt.u32.totalorder %s190_s16, %s325_s2 }
  0x28   :  { %p196_p4 = pnand %p194_p3, %p191_p2 }
  0x2a   :  { %199 = shalt.err (!%p196_p4)
}
  0x2b   :  { %s200_s21 = scalar_lea.vmem %s40_s12, 16  ;;  %s204_s0 = scalar_lea.vmem %s40_s12, 32 }
  0x2c   :  { %p201_p5 = scmp.ne.s32.totalorder %s40_s12, %s200_s21  ;;  %p205_p6 = scmp.lt.s32.totalorder %s40_s12, %s40_s12 }
  0x2d   :  { %p206_p7 = scmp.lt.s32.totalorder %s204_s0, %s200_s21 }
  0x2f   :  { %p207_p8 = por %p206_p7, %p205_p6 }
  0x31   :  { %p208_p9 = pnand %p207_p8, %p201_p5 }
  0x33   :  { %211 = shalt.err (!%p208_p9)
}
  0x34   :  { %42 = dma.hbm_to_vmem [thread:$0]  %s325_s2, 16, %s40_s12, [#allocation6]  }
  0x35   :  { %234 = dma.done.wait [#allocation3], 256  }
  0x36   :  { %235 = vsyncadd [#allocation3], 4294967040 }
  0x37   :  { %236 = dma.done.wait [#allocation6], 32  }
  0x38   :  { %237 = vsyncadd [#allocation6], 4294967264  ;;  %v52_v0 = vld [vmem:[#allocation2] sm:$0xff]  ;;  %v53_v1 = vld [vmem:[#allocation2 + $0x8] sm:$0xff]  ;;  %s245_s2 = smov [#allocation8]  }
  0x39   :  { %54 = vadd.xlane.f32.xlu0 %v52_v0  ;;  %v123_v16 = vld [vmem:[#allocation5] ss:$0 sm:$0xff]  ;;  %v124_v22 = vld [vmem:[#allocation7] ss:$0 sm:$0xff]  ;;  %s110_s23 = sshll.u32 %s245_s2, 4  ;;  %s111_s23 = int_to_ptr.vmem [resolvable:$true] %s110_s23 }
  0x3a   :  { %s212_s24 = scalar_lea.vmem %s111_s23, 128  ;;  %p217_p11 = scmp.lt.s32.totalorder %s111_s23, %s111_s23 }
  0x3b   :  { %p213_p10 = scmp.ne.s32.totalorder %s111_s23, %s212_s24  ;;  %p218_p12 = scmp.lt.s32.totalorder %s212_s24, %s212_s24 }
  0x3d   :  { %56 = vadd.xlane.f32.xlu0 %v53_v1  ;;  %p219_p13 = por %p218_p12, %p217_p11 }
  0x3f   :  { %p220_p0 = pnand %p219_p13, %p213_p10 }
  0xc6   :  { %v55_v2 = vpop.xlane.xlu0 %54 }
  0xc7   :  { %v59_v3 = vmul.f32 0.0078125, %v55_v2 }
  0xc9   :  { %v61_v4 = vsub.f32 %v52_v0, %v59_v3 }
  0xca   :  { %v57_v5 = vpop.xlane.xlu0 %56 }
  0xcb   :  { %v60_v6 = vmul.f32 0.0078125, %v57_v5  ;;  %v63_v7 = vmul.f32 %v61_v4, %v61_v4  ;;  %v78_v18 = vmul.f32 %v123_v16, %v61_v4 }
  0xcd   :  { %v62_v8 = vsub.f32 %v53_v1, %v60_v6  ;;  %65 = vadd.xlane.f32.xlu1 %v63_v7 }
  0xcf   :  { %v64_v9 = vmul.f32 %v62_v8, %v62_v8  ;;  %v79_v19 = vmul.f32 %v123_v16, %v62_v8 }
  0xd1   :  { %67 = vadd.xlane.f32.xlu1 %v64_v9 }
 0x15a   :  { %v66_v10 = vpop.xlane.xlu1 %65 }
 0x15b   :  { %v69_v11 = vmul.f32 0.0078125, %v66_v10 }
 0x15d   :  { %v80_v12 = vadd.f32 1e-12, %v69_v11 }
 0x15e   :  { %v68_v13 = vpop.xlane.xlu1 %67 }
 0x15f   :  { %142 = vrcp.f32 %v80_v12  ;;  %v70_v14 = vmul.f32 0.0078125, %v68_v13 }
 0x161   :  { %v81_v15 = vadd.f32 1e-12, %v70_v14 }
 0x163   :  { %144 = vrcp.f32 %v81_v15 }
 0x169   :  { %v143_v17 = vpop.eup %142 }
 0x16a   :  { %v83_v20 = vmul.f32 %v143_v17, %v78_v18 }
 0x16c   :  { %v93_v24 = vadd.f32 %v124_v22, %v83_v20 }
 0x16d   :  { %v145_v21 = vpop.eup %144 }
 0x16e   :  { %v85_v23 = vmul.f32 %v145_v21, %v79_v19 }
 0x170   :  { %v94_v25 = vadd.f32 %v124_v22, %v85_v23 }
 0x172   :  { %v132_v26 = vpack.c.bf16 %v94_v25, %v93_v24 }
 0x174   :  { %133 = vst [vmem:[#allocation8] sm:$0xff] %v132_v26  }
 0x175   :  { %223 = shalt.err (!%p220_p0)
}
 0x176   :  { %s224_s27 = scalar_lea.hbm %s326_s3, 128 }
 0x177   :  { %p225_p1 = scmp.ne.s32.totalorder %s326_s3, %s224_s27  ;;  %p228_p2 = scmp.lt.u32.totalorder %s224_s27, %s326_s3 }
 0x179   :  { %p230_p3 = pnand %p228_p2, %p225_p1 }
 0x17b   :  { %233 = shalt.err (!%p230_p3)
}
 0x17c   :  { %s246_s5 = smov 64   ;;  %s247_s6 = smov 4  }
 0x17d   :  { %116 = dma.vmem_to_hbm [thread:$0]  %s111_s23, 128, %s326_s3, [#allocation4], %s246_s5, %s246_s5, %s247_s6  }
 0x17e   :  { %238 = dma.done.wait [#allocation4], 128  }
 0x17f   :  { %239 = vsyncadd [#allocation4], 4294967168 }
 0x180   :  { %120 = vsyncpa [#allocation3], 1 }
 0x181   :  { %121 = vsyncpa [#allocation6], 1 }
 0x182   :  { %122 = vsyncpa [#allocation4], 1 }

</bundles_post_ra>
